<compile_context>
chip_gen: v7x
topology: tpu7x:2x2x1
jax: 0.10.0
libtpu: 0.0.40
codegen_flags: <defaults>
</compile_context>

<pallas_src>
import functools
import math

import jax
import jax.numpy as jnp
from jax import lax
from jax.experimental import pallas as pl
from jax.experimental.pallas import tpu as pltpu

VMEM_LIMIT = 32 * 1024 * 1024          # safe scoped-VMEM request on v5e / v6e / v7x


def _pick_time_chunk(T, B, H, budget_bytes=2 * 1024 * 1024):
    """Largest divisor of T whose per-buffer gx chunk (chunk*B*4H bf16) fits the budget."""
    best = 1
    for c in range(1, T + 1):
        if T % c == 0 and c * B * 4 * H * 2 <= budget_bytes:
            best = c
    return best


def _lstm_cell(gates_x, h, c, w_hh, H):
    """One LSTM cell update (PyTorch gate order i, f, g, o).

    gates_x: (B,4H) bf16 precomputed x-projection; h, c: (B,H) f32; w_hh: (H,4H) bf16.
    Only the matmul operands are bf16; all elementwise/transcendental math stays f32.
    """
    # TODO(synk): hold W_hh stationary across the time loop via pltpu.matmul_push_rhs /
    #             matmul_acc_lhs instead of re-streaming it into the MXU every step.
    # TODO(synk): for H not a multiple of 128, a gate-major (4,B,H) gx layout would avoid
    #             masked lane sub-slices below.
    g = gates_x.astype(jnp.float32) + jnp.dot(
        h.astype(jnp.bfloat16), w_hh, preferred_element_type=jnp.float32)
    i_g = jax.nn.sigmoid(g[:, 0 * H:1 * H])
    f_g = jax.nn.sigmoid(g[:, 1 * H:2 * H])
    g_g = jnp.tanh(g[:, 2 * H:3 * H])
    o_g = jax.nn.sigmoid(g[:, 3 * H:4 * H])
    c_new = f_g * c + i_g * g_g
    h_new = o_g * jnp.tanh(c_new)
    return h_new, c_new


# -----------------------------------------------------------------------------
# Pallas kernels
# -----------------------------------------------------------------------------
def input_proj_kernel(*refs, n_in):
    """gates_x = sum_i x_i @ W_i + b for one (direction, time-chunk) grid point.

    refs: x_0..x_{n-1} (chunk,B,Din_i) bf16, W_0..W_{n-1} (Din_i,4H) bf16,
          b (1,4H) f32, out gx (chunk,B,4H) bf16.
    Multiple x inputs let layer>0 consume the fwd/bwd slabs directly (no concat).
    """
    xs = refs[:n_in]
    ws = refs[n_in:2 * n_in]
    b_ref = refs[2 * n_in]
    gx_ref = refs[2 * n_in + 1]
    tt, bb, gg = gx_ref.shape

    acc = jnp.dot(xs[0][...].reshape(tt * bb, -1), ws[0][...],
                  preferred_element_type=jnp.float32)
    for i in range(1, n_in):
        acc = acc + jnp.dot(xs[i][...].reshape(tt * bb, -1), ws[i][...],
                            preferred_element_type=jnp.float32)
    gx_ref[...] = (acc + b_ref[...]).reshape(tt, bb, gg).astype(gx_ref.dtype)


def lstm_seq_kernel(*refs, chunk, hidden, num_dirs, unroll):
    """One time-chunk of the (bi)directional LSTM recurrence (non-final layers).

    Grid axis 0 = time chunk ("arbitrary", sequential).  h/c live in VMEM scratch and are
    carried across chunks.  The forward direction consumes chunk c, the backward direction
    consumes chunk n_chunks-1-c (reversed index_map) and walks it back-to-front, so both
    directions finish after the last grid step.  Both chains are interleaved per step.
    """
    if num_dirs == 2:
        gx_f, gx_b, whh_ref, out_f, out_b, h_scr, c_scr = refs
    else:
        gx_f, whh_ref, out_f, h_scr, c_scr = refs
        gx_b = out_b = None
    H = hidden

    @pl.when(pl.program_id(0) == 0)
    def _init():
        h_scr[...] = jnp.zeros_like(h_scr)
        c_scr[...] = jnp.zeros_like(c_scr)

    whh_f = whh_ref[0]                              # hoist weight loads out of the loop
    carry0 = [h_scr[0], c_scr[0]]
    if num_dirs == 2:
        whh_b = whh_ref[1]
        carry0 += [h_scr[1], c_scr[1]]

    def step(t, carry):
        hf, cf = _lstm_cell(gx_f[t], carry[0], carry[1], whh_f, H)
        out_f[t] = hf.astype(out_f.dtype)
        new = [hf, cf]
        if num_dirs == 2:
            tb = (chunk - 1) - t                    # within-chunk reversed walk
            hb, cb = _lstm_cell(gx_b[tb], carry[2], carry[3], whh_b, H)
            out_b[tb] = hb.astype(out_b.dtype)
            new += [hb, cb]
        return tuple(new)

    carry = lax.fori_loop(0, chunk, step, tuple(carry0), unroll=unroll)
    h_scr[0] = carry[0]
    c_scr[0] = carry[1]
    if num_dirs == 2:
        h_scr[1] = carry[2]
        c_scr[1] = carry[3]


def lstm_final_kernel(*refs, chunk, hidden, num_dirs, n_chunks, unroll):
    """Last LSTM layer fused with the fc classifier.

    Same chunked recurrence as lstm_seq_kernel but no sequence writeback; at the last chunk
    both directions' final hidden states are already in registers/scratch and the linear
    head is applied on data in VMEM.  Output (B,O) is the only HBM store.
    """
    if num_dirs == 2:
        gx_f, gx_b, whh_ref, fcw_ref, fcb_ref, out_ref, h_scr, c_scr = refs
    else:
        gx_f, whh_ref, fcw_ref, fcb_ref, out_ref, h_scr, c_scr = refs
        gx_b = None
    H = hidden

    @pl.when(pl.program_id(0) == 0)
    def _init():
        h_scr[...] = jnp.zeros_like(h_scr)
        c_scr[...] = jnp.zeros_like(c_scr)

    whh_f = whh_ref[0]
    carry0 = [h_scr[0], c_scr[0]]
    if num_dirs == 2:
        whh_b = whh_ref[1]
        carry0 += [h_scr[1], c_scr[1]]

    def step(t, carry):
        hf, cf = _lstm_cell(gx_f[t], carry[0], carry[1], whh_f, H)
        new = [hf, cf]
        if num_dirs == 2:
            tb = (chunk - 1) - t
            hb, cb = _lstm_cell(gx_b[tb], carry[2], carry[3], whh_b, H)
            new += [hb, cb]
        return tuple(new)

    carry = lax.fori_loop(0, chunk, step, tuple(carry0), unroll=unroll)
    h_scr[0] = carry[0]
    c_scr[0] = carry[1]
    if num_dirs == 2:
        h_scr[1] = carry[2]
        c_scr[1] = carry[3]

    @pl.when(pl.program_id(0) == n_chunks - 1)
    def _fc():
        # hidden[-2] == forward final h, hidden[-1] == backward final h (PyTorch semantics).
        logits = jnp.dot(carry[0].astype(jnp.bfloat16), fcw_ref[0:H, :],
                         preferred_element_type=jnp.float32)
        if num_dirs == 2:
            logits_b = jnp.dot(carry[2].astype(jnp.bfloat16), fcw_ref[H:2 * H, :],
                               preferred_element_type=jnp.float32)
            out_ref[...] = (logits + logits_b + fcb_ref[...]).astype(out_ref.dtype)
        else:
            out_ref[...] = (logits + fcb_ref[...]).astype(out_ref.dtype)


# -----------------------------------------------------------------------------
# Pallas wrappers
# -----------------------------------------------------------------------------
def input_projection(xs, ws, b, *, T, B, H, num_dirs, chunk):
    """xs: list of (T,B,Din_i) bf16; ws: list of (num_dirs,Din_i,4H) bf16; b: (num_dirs,1,4H).
    Returns gx (num_dirs, T, B, 4H) bf16 (hoisted x-projection for all timesteps/dirs)."""
    G = 4 * H
    n_chunks = T // chunk
    in_specs = []
    for x in xs:
        in_specs.append(pl.BlockSpec((chunk, B, x.shape[-1]), lambda d, c: (c, 0, 0)))
    for w in ws:
        in_specs.append(pl.BlockSpec((None, w.shape[1], G), lambda d, c: (d, 0, 0)))
    in_specs.append(pl.BlockSpec((None, 1, G), lambda d, c: (d, 0, 0)))
    return pl.pallas_call(
        functools.partial(input_proj_kernel, n_in=len(xs)),
        out_shape=jax.ShapeDtypeStruct((num_dirs, T, B, G), jnp.bfloat16),
        grid=(num_dirs, n_chunks),
        in_specs=in_specs,
        out_specs=pl.BlockSpec((None, chunk, B, G), lambda d, c: (d, c, 0, 0)),
        compiler_params=pltpu.CompilerParams(
            dimension_semantics=("parallel", "arbitrary"),
            vmem_limit_bytes=VMEM_LIMIT),
    )(*xs, *ws, b)


def lstm_layer_sequence(gx, w_hh, *, T, B, H, num_dirs, chunk):
    """Non-final layer: returns (out_fwd, [out_bwd]) each (T,B,H) bf16 in original time order."""
    G = 4 * H
    n_chunks = T // chunk
    unroll = math.gcd(chunk, 8)
    kern = functools.partial(lstm_seq_kernel, chunk=chunk, hidden=H,
                             num_dirs=num_dirs, unroll=unroll)

    in_specs = [pl.BlockSpec((None, chunk, B, G), lambda c: (0, c, 0, 0))]
    args = [gx]
    if num_dirs == 2:
        in_specs.append(pl.BlockSpec((None, chunk, B, G),
                                     lambda c: (1, n_chunks - 1 - c, 0, 0)))
        args.append(gx)                                  # same array, reversed chunk walk
    in_specs.append(pl.BlockSpec((num_dirs, H, G), lambda c: (0, 0, 0)))
    args.append(w_hh)

    spec_f = pl.BlockSpec((chunk, B, H), lambda c: (c, 0, 0))
    if num_dirs == 2:
        out_shape = (jax.ShapeDtypeStruct((T, B, H), jnp.bfloat16),
                     jax.ShapeDtypeStruct((T, B, H), jnp.bfloat16))
        out_specs = (spec_f,
                     pl.BlockSpec((chunk, B, H), lambda c: (n_chunks - 1 - c, 0, 0)))
    else:
        out_shape = jax.ShapeDtypeStruct((T, B, H), jnp.bfloat16)
        out_specs = spec_f

    res = pl.pallas_call(
        kern,
        out_shape=out_shape,
        grid=(n_chunks,),
        in_specs=in_specs,
        out_specs=out_specs,
        scratch_shapes=[pltpu.VMEM((num_dirs, B, H), jnp.float32),
                        pltpu.VMEM((num_dirs, B, H), jnp.float32)],
        compiler_params=pltpu.CompilerParams(
            dimension_semantics=("arbitrary",),          # sequential: h/c carried in scratch
            vmem_limit_bytes=VMEM_LIMIT),
    )(*args)
    return tuple(res) if num_dirs == 2 else (res,)


def lstm_final_and_fc(gx, w_hh, fc_w, fc_b, *, T, B, H, num_dirs, out_dim, chunk):
    """Final layer + classifier head fused: returns logits (B, O) f32."""
    G = 4 * H
    n_chunks = T // chunk
    unroll = math.gcd(chunk, 8)
    kern = functools.partial(lstm_final_kernel, chunk=chunk, hidden=H,
                             num_dirs=num_dirs, n_chunks=n_chunks, unroll=unroll)

    in_specs = [pl.BlockSpec((None, chunk, B, G), lambda c: (0, c, 0, 0))]
    args = [gx]
    if num_dirs == 2:
        in_specs.append(pl.BlockSpec((None, chunk, B, G),
                                     lambda c: (1, n_chunks - 1 - c, 0, 0)))
        args.append(gx)
    in_specs += [
        pl.BlockSpec((num_dirs, H, G), lambda c: (0, 0, 0)),
        pl.BlockSpec((num_dirs * H, out_dim), lambda c: (0, 0)),
        pl.BlockSpec((1, out_dim), lambda c: (0, 0)),
    ]
    args += [w_hh, fc_w, fc_b]

    return pl.pallas_call(
        kern,
        out_shape=jax.ShapeDtypeStruct((B, out_dim), jnp.float32),
        grid=(n_chunks,),
        in_specs=in_specs,
        out_specs=pl.BlockSpec((B, out_dim), lambda c: (0, 0)),
        scratch_shapes=[pltpu.VMEM((num_dirs, B, H), jnp.float32),
                        pltpu.VMEM((num_dirs, B, H), jnp.float32)],
        compiler_params=pltpu.CompilerParams(
            dimension_semantics=("arbitrary",),
            vmem_limit_bytes=VMEM_LIMIT),
    )(*args)


def lstm_classifier_forward(text, params, *, n_layers, bidirectional, hidden_dim,
                            time_chunk=None):
    """text: (B, T) int32 token ids.  Returns logits (B, output_dim) f32."""
    B_orig, T = text.shape
    H = hidden_dim
    num_dirs = 2 if bidirectional else 1
    out_dim = params["fc_w"].shape[1]

    # Pad batch to the 8-row sublane quantum so every vreg row / MXU M row is used.
    B = max(8, ((B_orig + 7) // 8) * 8)
    if B != B_orig:
        text = jnp.pad(text, ((0, B - B_orig), (0, 0)))

    # Embedding lookup (XLA gather) + time-major transpose; dropout = identity (eval mode).
    # TODO(synk): fuse the embedding gather into the first layer's input projection via
    #             scalar-prefetched token ids instead of an XLA gather.
    emb = params["embedding"][text]                          # (B, T, E) f32
    x = jnp.transpose(emb, (1, 0, 2)).astype(jnp.bfloat16)   # (T, B, E) bf16

    chunk = time_chunk if time_chunk is not None else _pick_time_chunk(T, B, H)
    assert T % chunk == 0, "time_chunk must divide the sequence length"
    bf = lambda a: a.astype(jnp.bfloat16)

    xs = [x]                      # feature slabs consumed by the next input projection
    logits = None
    for layer in range(n_layers):
        p = params["lstm"][layer]
        if len(xs) == 1:
            ws = [bf(p["w_ih"])]                              # (nd, Din, 4H)
        else:                                                 # bidirectional layer > 0
            ws = [bf(p["w_ih"][:, :H, :]), bf(p["w_ih"][:, H:, :])]

        # Hoisted input projection: one chunked matmul per direction for all timesteps.
        gx = input_projection(xs, ws, p["b"], T=T, B=B, H=H,
                              num_dirs=num_dirs, chunk=chunk)  # (nd, T, B, 4H) bf16

        if layer < n_layers - 1:
            xs = list(lstm_layer_sequence(gx, bf(p["w_hh"]), T=T, B=B, H=H,
                                          num_dirs=num_dirs, chunk=chunk))
        else:
            # Last layer: only final hidden states are needed -> fused with fc head.
            logits = lstm_final_and_fc(gx, bf(p["w_hh"]), bf(params["fc_w"]),
                                       params["fc_b"], T=T, B=B, H=H,
                                       num_dirs=num_dirs, out_dim=out_dim, chunk=chunk)
    return logits[:B_orig]


# -----------------------------------------------------------------------------
# Deterministic parameter init (PyTorch shapes, uniform(-1/sqrt(H), 1/sqrt(H)))
# -----------------------------------------------------------------------------
def init_params(key, vocab_size, embedding_dim, hidden_dim, output_dim, n_layers, bidirectional):
    H = hidden_dim
    bound = 1.0 / (H ** 0.5)
    num_dirs = 2 if bidirectional else 1
    params = {}

    key, k_emb = jax.random.split(key)
    params["embedding"] = jax.random.normal(k_emb, (vocab_size, embedding_dim), jnp.float32)

    params["lstm"] = []
    for layer in range(n_layers):
        in_dim = embedding_dim if layer == 0 else H * num_dirs
        w_ih_l, w_hh_l, b_l = [], [], []
        for _ in range(num_dirs):
            key, k1, k2, k3, k4 = jax.random.split(key, 5)
            w_ih = jax.random.uniform(k1, (4 * H, in_dim), jnp.float32, -bound, bound)
            w_hh = jax.random.uniform(k2, (4 * H, H), jnp.float32, -bound, bound)
            b_ih = jax.random.uniform(k3, (4 * H,), jnp.float32, -bound, bound)
            b_hh = jax.random.uniform(k4, (4 * H,), jnp.float32, -bound, bound)
            w_ih_l.append(w_ih.T)                     # (in_dim, 4H)
            w_hh_l.append(w_hh.T)                     # (H, 4H)
            b_l.append((b_ih + b_hh)[None, :])        # (1, 4H) folded biases
        params["lstm"].append({
            "w_ih": jnp.stack(w_ih_l),                # (num_dirs, in_dim, 4H)
            "w_hh": jnp.stack(w_hh_l),                # (num_dirs, H, 4H)
            "b": jnp.stack(b_l),                      # (num_dirs, 1, 4H)
        })

    fc_in = H * num_dirs
    key, k5, k6 = jax.random.split(key, 3)
    fc_bound = 1.0 / (fc_in ** 0.5)
    params["fc_w"] = jax.random.uniform(k5, (fc_in, output_dim), jnp.float32, -fc_bound, fc_bound)
    params["fc_b"] = jax.random.uniform(k6, (1, output_dim), jnp.float32, -fc_bound, fc_bound)
    return params


# -----------------------------------------------------------------------------
# Pure-JAX reference (matches the kernel's bf16 MXU-operand rounding points)
# -----------------------------------------------------------------------------
def ref_forward(text, params, *, n_layers, bidirectional, hidden_dim):
    H = hidden_dim
    bf = lambda a: a.astype(jnp.bfloat16)
    emb = params["embedding"][text]                         # (B, T, E)
    x = bf(jnp.transpose(emb, (1, 0, 2)))                   # (T, B, E) bf16
    num_dirs = 2 if bidirectional else 1

    finals = []
    for layer in range(n_layers):
        p = params["lstm"][layer]
        T, B, _ = x.shape
        outs, lay_finals = [], []
        for d in range(num_dirs):
            w_ih = bf(p["w_ih"][d])
            w_hh = bf(p["w_hh"][d])
            b = p["b"][d]
            gx = jnp.dot(x.reshape(T * B, -1), w_ih,
                         preferred_element_type=jnp.float32) + b
            gx = bf(gx).reshape(T, B, 4 * H)                # stored bf16, like the kernel
            gxd = gx[::-1] if d == 1 else gx

            def step(carry, g):
                h, c = carry
                gt = g.astype(jnp.float32) + jnp.dot(bf(h), w_hh,
                                                     preferred_element_type=jnp.float32)
                i = jax.nn.sigmoid(gt[:, :H])
                f = jax.nn.sigmoid(gt[:, H:2 * H])
                gg = jnp.tanh(gt[:, 2 * H:3 * H])
                o = jax.nn.sigmoid(gt[:, 3 * H:])
                c = f * c + i * gg
                h = o * jnp.tanh(c)
                return (h, c), h

            init = (jnp.zeros((B, H), jnp.float32), jnp.zeros((B, H), jnp.float32))
            (h_fin, _), hs = lax.scan(step, init, gxd)
            if d == 1:
                hs = hs[::-1]
            outs.append(bf(hs))
            lay_finals.append(h_fin)
        x = jnp.concatenate(outs, axis=-1) if num_dirs == 2 else outs[0]
        finals = lay_finals

    hidden = finals[0]
    if bidirectional:
        hidden = jnp.concatenate([finals[0], finals[1]], axis=1)
    return jnp.dot(bf(hidden), bf(params["fc_w"]),
                   preferred_element_type=jnp.float32) + params["fc_b"]


# -----------------------------------------------------------------------------
if __name__ == "__main__":
    # Small, module-consistent shapes.
    VOCAB = 50
    EMB = 16
    HID = 32
    OUT = 4
    N_LAYERS = 2
    BIDIR = True
    BATCH = 2
    SEQ = 8

    key = jax.random.PRNGKey(0)
    key, k_text = jax.random.split(key)
    text = jax.random.randint(k_text, (BATCH, SEQ), 0, VOCAB, dtype=jnp.int32)

    params = init_params(key, VOCAB, EMB, HID, OUT, N_LAYERS, BIDIR)

    # time_chunk=4 -> 2 time chunks: exercises the streamed h/c carry and the reversed
    # backward-direction chunk index_map, not just the single-chunk fast path.
    out = lstm_classifier_forward(text, params, n_layers=N_LAYERS,
                                  bidirectional=BIDIR, hidden_dim=HID, time_chunk=4)
    out = jax.block_until_ready(out)

    ref = ref_forward(text, params, n_layers=N_LAYERS,
                      bidirectional=BIDIR, hidden_dim=HID)
    assert out.shape == (BATCH, OUT)
    # bf16 MXU operands -> compare against a reference with matched rounding points.
    assert jnp.allclose(out, ref, atol=1e-2, rtol=1e-2), "Pallas output mismatch vs reference"

    print("KERNEL_OK")
</pallas_src>

<mosaic_0001>
module attributes {stable_mosaic.version = 11 : i64} {
  func.func @input_proj_kernel(%arg0: i32, %arg1: i32, %arg2: memref<4x8x16xbf16, #tpu.memory_space<vmem>>, %arg3: memref<1x16x128xbf16, #tpu.memory_space<vmem>>, %arg4: memref<1x1x128xf32, #tpu.memory_space<vmem>>, %arg5: memref<1x4x8x128xbf16, #tpu.memory_space<vmem>>) attributes {dimension_semantics = [#tpu.dimension_semantics<parallel>, #tpu.dimension_semantics<arbitrary>], iteration_bounds = array<i64: 2, 2>, scalar_prefetch = 0 : i64, scratch_operands = 0 : i64, tpu.core_type = #tpu.core_type<tc>, window_params = [{transform_indices = @transform_0, window_bounds = array<i64: 4, 8, 16>}, {transform_indices = @transform_1, window_bounds = array<i64: 1, 16, 128>}, {transform_indices = @transform_2, window_bounds = array<i64: 1, 1, 128>}, {transform_indices = @transform_3, window_bounds = array<i64: 1, 4, 8, 128>}]} {
    %c0 = arith.constant 0 : index
    %c0_0 = arith.constant 0 : index
    %c0_1 = arith.constant 0 : index
    %0 = vector.load %arg2[%c0, %c0_0, %c0_1] : memref<4x8x16xbf16, #tpu.memory_space<vmem>>, vector<4x8x16xbf16>
    %1 = vector.shape_cast %0 : vector<4x8x16xbf16> to vector<32x16xbf16>
    %c0_2 = arith.constant 0 : index
    %c0_3 = arith.constant 0 : index
    %c0_4 = arith.constant 0 : index
    %2 = vector.load %arg3[%c0_2, %c0_3, %c0_4] : memref<1x16x128xbf16, #tpu.memory_space<vmem>>, vector<1x16x128xbf16>
    %3 = vector.shape_cast %2 : vector<1x16x128xbf16> to vector<16x128xbf16>
    %cst = arith.constant dense<0.000000e+00> : vector<32x128xf32>
    %4 = tpu.matmul %1, %3, %cst {dimension_numbers = #tpu.dot_dimension_numbers<[1], [0], [0], [1], [0, 0, 1, 1], [], []>} : vector<32x16xbf16>, vector<16x128xbf16>, vector<32x128xf32> -> vector<32x128xf32>
    %c0_5 = arith.constant 0 : index
    %c0_6 = arith.constant 0 : index
    %c0_7 = arith.constant 0 : index
    %5 = vector.load %arg4[%c0_5, %c0_6, %c0_7] : memref<1x1x128xf32, #tpu.memory_space<vmem>>, vector<1x1x128xf32>
    %6 = vector.shape_cast %5 : vector<1x1x128xf32> to vector<1x128xf32>
    %7 = vector.broadcast %6 : vector<1x128xf32> to vector<32x128xf32>
    %8 = arith.addf %4, %7 : vector<32x128xf32>
    %9 = vector.shape_cast %8 : vector<32x128xf32> to vector<4x8x128xf32>
    %10 = arith.truncf %9 : vector<4x8x128xf32> to vector<4x8x128xbf16>
    %c0_8 = arith.constant 0 : index
    %c0_9 = arith.constant 0 : index
    %c0_10 = arith.constant 0 : index
    %c0_11 = arith.constant 0 : index
    %11 = vector.load %arg5[%c0_8, %c0_9, %c0_10, %c0_11] : memref<1x4x8x128xbf16, #tpu.memory_space<vmem>>, vector<1x4x8x128xbf16>
    %12 = vector.shape_cast %11 : vector<1x4x8x128xbf16> to vector<4x8x128xbf16>
    %13 = vector.shape_cast %10 : vector<4x8x128xbf16> to vector<1x4x8x128xbf16>
    tpu.vector_store %arg5[%c0_8, %c0_9, %c0_10, %c0_11], %13 {strides = array<i32>} : memref<1x4x8x128xbf16, #tpu.memory_space<vmem>>, vector<1x4x8x128xbf16>,
    return
  }
  func.func @transform_0(%arg0: i32, %arg1: i32) -> (i32, i32, i32) {
    %c0_i32 = arith.constant 0 : i32
    %c0_i32_0 = arith.constant 0 : i32
    %c0_i32_1 = arith.constant 0 : i32
    return %arg1, %c0_i32, %c0_i32_0 : i32, i32, i32
  }
  func.func @transform_1(%arg0: i32, %arg1: i32) -> (i32, i32, i32) {
    %c0_i32 = arith.constant 0 : i32
    %c0_i32_0 = arith.constant 0 : i32
    %c0_i32_1 = arith.constant 0 : i32
    return %arg0, %c0_i32, %c0_i32_0 : i32, i32, i32
  }
  func.func @transform_2(%arg0: i32, %arg1: i32) -> (i32, i32, i32) {
    %c0_i32 = arith.constant 0 : i32
    %c0_i32_0 = arith.constant 0 : i32
    %c0_i32_1 = arith.constant 0 : i32
    return %arg0, %c0_i32, %c0_i32_0 : i32, i32, i32
  }
  func.func @transform_3(%arg0: i32, %arg1: i32) -> (i32, i32, i32, i32) {
    %c0_i32 = arith.constant 0 : i32
    %c0_i32_0 = arith.constant 0 : i32
    %c0_i32_1 = arith.constant 0 : i32
    return %arg0, %arg1, %c0_i32, %c0_i32_0 : i32, i32, i32, i32
  }
}

</mosaic_0001>

<bundles_post_ra>
// kernel: tpu_custom_call.1
= control target key start
LH: loop header
LB: loop body
LE: loop exit
PB: predicated region body
PF: predicated region fallthrough
CT: control target
= control target key end

     0   :  { %s1275_s0 = inlined_call_operand.hbm [shape: bf16[8,8,16], index: 0, kind: input, shape index: {}]   ;;  %s1276_s1 = inlined_call_operand.hbm [shape: bf16[2,16,128], index: 1, kind: input, shape index: {}]   ;;  %s1277_s2 = inlined_call_operand.vmem [shape: f32[2,1,128], index: 2, kind: input, shape index: {}]   ;;  %s1278_s3 = inlined_call_operand.hbm [shape: bf16[2,8,8,128], index: 3, kind: output, shape index: {}]  }
   0x1   :  { %1292 = sst [smem:[#allocation16_spill]] %s1275_s0 }
   0x2   :  { %1293 = sst [smem:[#allocation17_spill]] %s1276_s1 }
   0x3   :  { %8 = vsyncpa [#allocation3], 0 }
   0x4   :  { %10 = vsyncpa [#allocation3 + $0x1], 0 }
   0x5   :  { %11 = vsyncpa [#allocation6], 0 }
   0x6   :  { %13 = vsyncpa [#allocation6 + $0x1], 0 }
   0x7   :  { %14 = vsyncpa [#allocation4], 0 }
   0x8   :  { %16 = vsyncpa [#allocation4 + $0x1], 0  ;;  %s913_s12 = smov 0   ;;  %s915_s13 = smov 0  }
   0x9   :  { %s917_s14 = smov 0   ;;  %s919_s15 = smov 0  }
   0xa   :  { %s921_s16 = smov 0   ;;  %s923_s17 = smov 0  }
   0xb   :  { %s925_s18 = smov 0   ;;  %s927_s19 = smov 0  }
   0xc   :  { %s929_s20 = smov 0   ;;  %s931_s21 = smov 0  }
   0xd   :  { %s933_s22 = smov 0   ;;  %s935_s23 = smov 0  }
   0xe   :  { %s937_s24 = smov 0   ;;  %s939_s25 = smov 0  }
   0xf LB: > { %1294 = sst [smem:[#allocation11_spill]] %s876_s23  ;;  %s31_s26 = sadd.s32 1, %s876_s23  ;;  %s884_s25 = sphi %s939_s25, %s22_s25   ;;  %s880_s24 = sphi %s937_s24, %s1327_s24   ;;  %s876_s23 = sphi %s935_s23, %s1326_s23   ;;  %s872_s22 = sphi %s933_s22, %s1325_s22   ;;  %s868_s21 = sphi %s931_s21, %s1324_s21   ;;  %s864_s20 = sphi %s929_s20, %s1336_s20   ;;  %s860_s19 = sphi %s927_s19, %s1335_s19   ;;  %s856_s18 = sphi %s925_s18, %s1334_s18   ;;  %s852_s17 = sphi %s923_s17, %s1333_s17   ;;  %s848_s16 = sphi %s921_s16, %s1332_s16   ;;  %s844_s15 = sphi %s919_s15, %s1331_s15   ;;  %s840_s14 = sphi %s917_s14, %s1330_s14   ;;  %s836_s13 = sphi %s915_s13, %s1329_s13   ;;  %s832_s12 = sphi %s913_s12, %s1328_s12  }
  0x10   : > { %1295 = sst [smem:[#allocation12_spill]] %s880_s24  ;;  %s1279_s27 = sadd.s32 4294967295, %s884_s25  }
  0x11   : > { %p983_p0 = scmp.ge.s32.totalorder %s31_s26, 2  ;;  %p48_p1 = scmp.ne.s32.totalorder %s864_s20, %s860_s19 }
  0x12   : > { %p1283_p2 = scmp.eq.s32.totalorder %s884_s25, 0  ;;  %s41_s29 = sadd.s32 1, %s864_s20 }
  0x13   : > { %s1338_s26 = smov (%p983_p0, %s31_s26), 0  ;;  %p54_p3 = scmp.ne.s32.totalorder %s860_s19, %s856_s18 }
  0x14   : > { %1297 = sst [smem:[#allocation13_spill]] %s1338_s26  ;;  %s998_s30 = ssub.s32 %s876_s23, %s1338_s26 }
  0x15   : > { %p1002_p4 = scmp.eq.s32.totalorder %s1279_s27, 0  ;;  %p39_p5 = scmp.eq.s32.totalorder %s998_s30, 0 }
  0x16   : > { %p50_p6 = por %p1283_p2, %p48_p1  ;;  %p1282_p8 = scmp.lt.s32.totalorder %s884_s25, 4 }
  0x17   : > { %s1298_s4 = scalar_select %p1002_p4, 1, 0 }
  0x18   : > { %p1011_p7 = por %p1002_p4, %p54_p3  ;;  %s158_s7 = sand.u32 1, %s864_s20  }
  0x19   : > { %s1016_s6 = scalar_select %p39_p5, %s864_s20, %s41_s29  }
  0x1a   : > { %s1299_s5 = scalar_select %p1011_p7, 1, 0 }
  0x1b   : > { %1300 = sst [smem:[#allocation14_spill]] %s1016_s6  ;;  %s492_s8 = sshll.u32 %s158_s7, 4 }
  0x1c   : > { %s514_s9 = sshll.u32 %s876_s23, 8  ;;  %s1301_s0 = sld [smem:[#allocation16_spill]] }
  0x1d   : > { %s162_s27 = scalar_lea.vmem [#allocation2], %s492_s8  ;;  %p1030_p9 = pnand %p1282_p8, %p50_p6 }
  0x1e   : > { %s169_s26 = sshll.u32 %s162_s27, 4  ;;  %s1035_s23 = scalar_lea.sflag [#allocation3], %s158_s7  ;;  %s1026_s26 = int_to_ptr.vmem [resolvable:$true] %s169_s26 }
  0x1f   : > { %p676_p12 = pneg %p1030_p9 }
  0x22   : > { %s1024_s18 = scalar_lea.hbm %s1301_s0, %s514_s9  ;;  %s679_s10 = scalar_lea.hbm %s1301_s0, 512 }
  0x23   : > { %s674_s9 = scalar_lea.hbm %s1024_s18, 256  ;;  %p680_p3 = scmp.lt.u32.totalorder %s1024_s18, %s1301_s0 }
  0x24   : > { %p675_p11 = scmp.ne.s32.totalorder %s1024_s18, %s674_s9  ;;  %p681_p5 = scmp.lt.u32.totalorder %s679_s10, %s674_s9 }
  0x25   : > { %p683_p8 = scmp.lt.u32.totalorder %s674_s9, %s1024_s18 }
  0x26   : > { %p677_p13 = pnand %p676_p12, %p675_p11  ;;  %p682_p6 = por %p681_p5, %p680_p3 }
  0x28   : > { %p678_p1 = pneg %p677_p13  ;;  %p684_p2 = por %p683_p8, %p682_p6 }
  0x2a   : > { %p685_p10 = pnand %p684_p2, %p678_p1 }
  0x2c   : > { %688 = shalt.err (!%p685_p10)
}
  0x2d   : > { %s689_s7 = scalar_lea.vmem %s1026_s26, 256  ;;  %s886_s27 = smov [#allocation2]  }
  0x2e   : > { %p690_p11 = scmp.ne.s32.totalorder %s1026_s26, %s689_s7  ;;  %s694_s8 = sshll.u32 %s886_s27, 4  ;;  %s695_s8 = int_to_ptr.vmem [resolvable:$false] %s694_s8 }
  0x2f   : > { %s696_s6 = scalar_lea.vmem %s695_s8, 512  ;;  %p697_p4 = scmp.lt.s32.totalorder %s1026_s26, %s695_s8 }
  0x30   : > { %p692_p13 = pnand %p690_p11, %p676_p12  ;;  %p698_p3 = scmp.lt.s32.totalorder %s696_s6, %s689_s7 }
  0x32   : > { %p693_p7 = pneg %p692_p13  ;;  %p699_p5 = por %p698_p3, %p697_p4 }
  0x34   : > { %p700_p8 = pnand %p699_p5, %p693_p7 }
  0x36   : > { %703 = shalt.err (!%p700_p8)
}
  0x37   : > { %s1286_s9 = smov 64   ;;  %s1287_s10 = smov 4  }
  0x38   : > { %545 = dma.hbm_to_vmem [thread:$0]  (!%p1030_p9), %s1024_s18, 256, %s1026_s26, %s1035_s23, %s1286_s9, %s1286_s9, %s1287_s10  }
  0x39   : > { %s1303_s11 = sadd.s32 4294967295, %s884_s25   ;;  %p204_p4 = scmp.lt.s32.totalorder %s884_s25, 5 }
  0x3a   : > { %p1068_p2 = scmp.eq.s32.totalorder %s1303_s11, 3  ;;  %p1305_p7 = scmp.ge.s32.totalorder %s884_s25, 1 }
  0x3b   : > { %s34_s29 = sadd.s32 1, %s880_s24  ;;  %s489_s23 = sadd.s32 4294967294, %s884_s25  }
  0x3c   : > { %p1075_p10 = pnand %p1305_p7, %p204_p4  ;;  %s1340_s29 = smov (!%p983_p0, %s34_s29), %s880_s24 }
  0x3d   : > { %s67_s26 = sadd.s32 1, %s852_s17  ;;  %p36_p9 = scmp.ge.s32.totalorder %s1340_s29, 2 }
  0x3e   : > { %p80_p12 = scmp.ne.s32.totalorder %s848_s16, %s844_s15  ;;  %p74_p1 = scmp.ne.s32.totalorder %s852_s17, %s848_s16 }
  0x3f   : > { %s121_s18 = sadd.s32 1, %s840_s14  ;;  %s1342_s29 = smov (%p36_p9, %s1340_s29), 0 }
  0x40   : > { %1307 = sst [smem:[#allocation15_spill]] %s1342_s29  ;;  %p1308_p6 = scmp.ne.s32.totalorder %s1298_s4, 0 }
  0x41   : > { %p131_p0 = scmp.ne.s32.totalorder %s840_s14, %s836_s13  ;;  %s64_s8 = ssub.s32 %s880_s24, %s1342_s29 }
  0x42   : > { %p1094_p11 = por %p80_p12, %p1308_p6  ;;  %p137_p13 = scmp.ne.s32.totalorder %s836_s13, %s832_s12 }
  0x43   : > { %p65_p3 = scmp.eq.s32.totalorder %s64_s8, 0  ;;  %s118_s15 = sor.u32 %s64_s8, %s998_s30 }
  0x44   : > { %s1309_s28 = scalar_select %p1094_p11, 1, 0 }
  0x45   : > { %p119_p5 = scmp.eq.s32.totalorder %s118_s15, 0  ;;  %p1107_p8 = por %p1068_p2, %p131_p0 }
  0x46   : > { %s1112_s11 = scalar_select %p65_p3, %s852_s17, %s67_s26  }
  0x47   : > { %s1310_s6 = scalar_select %p1107_p8, 1, 0 }
  0x48   : > { %s1115_s4 = scalar_select %p119_p5, %s840_s14, %s121_s18  }
  0x49   : > { %p138_p4 = scmp.eq.s32.totalorder %s489_s23, 3  ;;  %s179_s9 = sand.u32 1, %s852_s17  }
  0x4a   : > { %p1311_p7 = scmp.eq.s32.totalorder %s884_s25, 0  ;;  %s495_s10 = sshll.u32 %s179_s9, 3 }
  0x4b   : > { %p1123_p12 = por %p138_p4, %p137_p13  ;;  %s515_s30 = sshll.u32 %s880_s24, 7 }
  0x4c   : > { %p76_p9 = por %p74_p1, %p1311_p7  ;;  %s183_s7 = scalar_lea.vmem [#allocation5], %s495_s10 }
  0x4d   : > { %s1312_s0 = scalar_select %p1123_p12, 1, 0 }
  0x4e   : > { %s190_s8 = sshll.u32 %s183_s7, 4  ;;  %s1313_s1 = sld [smem:[#allocation17_spill]]  ;;  %s1133_s8 = int_to_ptr.vmem [resolvable:$true] %s190_s8 }
  0x4f   : > { %p1314_p2 = scmp.lt.s32.totalorder %s884_s25, 4  ;;  %s1141_s10 = scalar_lea.sflag [#allocation6], %s179_s9 }
  0x51   : > { %p1137_p1 = pnand %p1314_p2, %p76_p9 }
  0x53   : > { %p706_p0 = pneg %p1137_p1 }
  0x54   : > { %s1131_s26 = scalar_lea.hbm %s1313_s1, %s515_s30  ;;  %s709_s7 = scalar_lea.hbm %s1313_s1, 256 }
  0x55   : > { %s704_s18 = scalar_lea.hbm %s1131_s26, 128  ;;  %p710_p5 = scmp.lt.u32.totalorder %s1131_s26, %s1313_s1 }
  0x56   : > { %p705_p6 = scmp.ne.s32.totalorder %s1131_s26, %s704_s18  ;;  %p711_p4 = scmp.lt.u32.totalorder %s709_s7, %s704_s18 }
  0x57   : > { %p713_p9 = scmp.lt.u32.totalorder %s704_s18, %s1131_s26 }
  0x58   : > { %p707_p13 = pnand %p706_p0, %p705_p6  ;;  %p712_p7 = por %p711_p4, %p710_p5 }
  0x5a   : > { %p708_p3 = pneg %p707_p13  ;;  %p714_p2 = por %p713_p9, %p712_p7 }
  0x5c   : > { %p715_p12 = pnand %p714_p2, %p708_p3 }
  0x5e   : > { %718 = shalt.err (!%p715_p12)
}
  0x5f   : > { %s719_s9 = scalar_lea.vmem %s1133_s8, 128  ;;  %s889_s29 = smov [#allocation5]  }
  0x60   : > { %p720_p6 = scmp.ne.s32.totalorder %s1133_s8, %s719_s9  ;;  %s724_s30 = sshll.u32 %s889_s29, 4  ;;  %s725_s30 = int_to_ptr.vmem [resolvable:$false] %s724_s30 }
  0x61   : > { %s726_s24 = scalar_lea.vmem %s725_s30, 256  ;;  %p727_p11 = scmp.lt.s32.totalorder %s1133_s8, %s725_s30 }
  0x62   : > { %p722_p13 = pnand %p720_p6, %p706_p0  ;;  %p728_p5 = scmp.lt.s32.totalorder %s726_s24, %s719_s9 }
  0x64   : > { %p723_p8 = pneg %p722_p13  ;;  %p729_p4 = por %p728_p5, %p727_p11 }
  0x66   : > { %p730_p7 = pnand %p729_p4, %p723_p8 }
  0x68   : > { %733 = shalt.err (!%p730_p7)
}
  0x69   : > { %s1316_s18 = smov 4   ;;  %s1317_s7 = smov 64  }
  0x6a   : > { %548 = dma.hbm_to_vmem [thread:$0]  (!%p1137_p1), %s1131_s26, 128, %s1133_s8, %s1141_s10, %s1317_s7, %s1317_s7, %s1316_s18  }
  0x6b   : > { %208 = sbr.rel (%p1075_p10) target bundleno = 358 (0x166), region = 32  ;;  %s210_s15 = sand.u32 (!%p1075_p10), 1, %s860_s19  }
  0x6c   : > { %s499_s29 = sshll.u32 (!%p1075_p10), %s210_s15, 4  ;;  %s211_s9 = scalar_lea.sflag (!%p1075_p10), [#allocation3], %s210_s15 }
  0x6d   : > { %s214_s30 = scalar_lea.vmem (!%p1075_p10), [#allocation2], %s499_s29  ;;  %p1318_p11 = scmp.ne.s32.totalorder (!%p1075_p10), %s1299_s5, 0 }
  0x72   : > { %819 = dma.done.wait (%p1318_p11), %s211_s9, 256  }
  0x73   : > { %821 = vsyncadd (%p1318_p11), %s211_s9, 4294967040  ;;  %s219_s23 = sand.u32 1, %s848_s16   ;;  %p1319_p8 = scmp.ne.s32.totalorder %s1309_s28, 0 }
  0x74   : > { %s500_s24 = sshll.u32 %s219_s23, 3  ;;  %s220_s1 = scalar_lea.sflag [#allocation6], %s219_s23 }
  0x75   : > { %s223_s8 = scalar_lea.vmem [#allocation5], %s500_s24 }
  0x76   : > { %823 = dma.done.wait (%p1319_p8), %s220_s1, 128  }
  0x77   : > { %825 = vsyncadd (%p1319_p8), %s220_s1, 4294967168  ;;  %v671_v0 = vld [vmem:[%s223_s8] sm:$0xff]   ;;  %vm289_vm0 = vcmask 130048   ;;  %v673_v2 = vld [vmem:[%s214_s30 + $0x8] sm:$0xff]   ;;  %p255_p10 = scmp.lt.s32.totalorder %s872_s22, 1  ;;  %s251_s5 = sand.u32 1, %s836_s13  }
  0x78   : > { %v672_v1 = vld [vmem:[%s214_s30] sm:$0xff]   ;;  %530 = vmatprep.subr.bf16.mxu0 %v671_v0  ;;  %s501_s26 = sshll.u32 %s251_s5, 4  ;;  %s509_s10 = sshll.u32 %s868_s21, 2 }
  0x79   : > { %531 = vmatpush3.bf16.msra.mxu0 %v671_v0  ;;  %532 = vmatprep.mubr.msk.bf16.mxu0 %vm289_vm0, %v672_v1  ;;  %s256_s27 = scalar_select %p255_p10, %s872_s22, 1 }
  0x7a   : > { %s510_s28 = sshll.u32 %s872_s22, 3  ;;  %s253_s29 = scalar_lea.vmem [#allocation7], %s501_s26 }
  0x7b   : > { %s257_s7 = scalar_lea.vmem %s1277_s2, %s256_s27  ;;  %s366_s15 = sadd.s32 %s510_s28, %s509_s10 }
  0x7c   : > { %533 = vmatmul.mubr.msk.bf16.vlgmr.msra.gmra.mrb[0].mxu0 %vm289_vm0, %v673_v2  ;;  %v502_v4 = vld [vmem:[%s257_s7] ss:$0 sm:$0xff]  ;;  %s369_s9 = sshll.u32 %s253_s29, 4  ;;  %s511_s30 = sshll.u32 %s366_s15, 6  ;;  %s1192_s9 = int_to_ptr.vmem [resolvable:$true] %s369_s9 }
  0x7d   : > { %s1197_s23 = scalar_lea.hbm %s1278_s3, %s511_s30  ;;  %s1199_s24 = scalar_lea.sflag [#allocation4], %s251_s5 }
  0x7e   : > { %s734_s8 = scalar_lea.vmem %s1192_s9, 256  ;;  %p1320_p1 = scmp.ne.s32.totalorder %s1310_s6, 0 }
  0x7f   : > { %p735_p12 = scmp.ne.s32.totalorder %s1192_s9, %s734_s8  ;;  %s890_s27 = smov [#allocation7]  }
  0x80   : > { %s738_s26 = sshll.u32 %s890_s27, 4  ;;  %s739_s26 = int_to_ptr.vmem [resolvable:$false] %s738_s26 }
  0x81   : > { %p736_p0 = pnand %p735_p12, %p1320_p1  ;;  %s740_s10 = scalar_lea.vmem %s739_s26, 512 }
  0x82   : > { %p741_p9 = scmp.lt.s32.totalorder %s1192_s9, %s739_s26  ;;  %p742_p2 = scmp.lt.s32.totalorder %s740_s10, %s734_s8 }
  0x83   : > { %p737_p3 = pneg %p736_p0 }
  0x84   : > { %p743_p6 = por %p742_p2, %p741_p9 }
  0x86   : > { %p744_p13 = pnand %p743_p6, %p737_p3 }
 0x14f   : > { %v534_v3 = vpop.f32.mrb[0].mxu0 }
 0x150   : > { %v330_v5 = vpop.f32.mrb[1].mxu0  ;;  %v339_v7 = vadd.f32 %v534_v3, %v502_v4 }
 0x151   : > { %v535_v6 = vpop.f32.mrb[2].mxu0  ;;  %v331_v10 = vadd.f32 %v502_v4, %v330_v5 }
 0x152   : > { %v342_v8 = vadd.f32 %v535_v6, %v502_v4  ;;  %v333_v9 = vpop.f32.mrb[3].mxu0 }
 0x153   : > { %v334_v11 = vadd.f32 %v502_v4, %v333_v9 }
 0x154   : > { %v524_v12 = vpack.c.bf16 %v342_v8, %v339_v7 }
 0x155   : > { %v519_v13 = vpack.c.bf16 %v334_v11, %v331_v10 }
 0x156   : > { %526 = vst [vmem:[%s253_s29 + $0x8] sm:$0xff] %v524_v12  }
 0x157   : > { %520 = vst [vmem:[%s253_s29] sm:$0xff] %v519_v13  }
 0x158   : > { %747 = shalt.err (!%p744_p13)
}
 0x159   : > { %s748_s5 = scalar_lea.hbm %s1197_s23, 256  ;;  %s752_s18 = scalar_lea.hbm %s1278_s3, 1024 }
 0x15a   : > { %p749_p5 = scmp.ne.s32.totalorder %s1197_s23, %s748_s5  ;;  %p753_p11 = scmp.lt.u32.totalorder %s1197_s23, %s1278_s3 }
 0x15b   : > { %p754_p8 = scmp.lt.u32.totalorder %s752_s18, %s748_s5  ;;  %p756_p12 = scmp.lt.u32.totalorder %s748_s5, %s1197_s23 }
 0x15c   : > { %p750_p4 = pnand %p749_p5, %p1320_p1 }
 0x15d   : > { %p755_p10 = por %p754_p8, %p753_p11 }
 0x15e   : > { %p751_p7 = pneg %p750_p4 }
 0x15f   : > { %p757_p0 = por %p756_p12, %p755_p10 }
 0x161   : > { %p758_p3 = pnand %p757_p0, %p751_p7 }
 0x163   : > { %761 = shalt.err (!%p758_p3)
}
 0x164   : > { %s891_s29 = smov 64   ;;  %s892_s30 = smov 4  }
 0x165   : > { %540 = dma.vmem_to_hbm [thread:$0]  (%p1320_p1), %s1192_s9, 256, %s1197_s23, %s1199_s24, %s891_s29, %s891_s29, %s892_s30  }
 0x166 PF: > { %p554_p9 = scmp.ge.s32.totalorder %s884_s25, 2  ;;  %s384_s21 = sand.u32 1, %s832_s12  }
 0x167   : > { %p1321_p2 = scmp.ne.s32.totalorder %s1312_s0, 0  ;;  %s385_s22 = scalar_lea.sflag [#allocation4], %s384_s21 }
 0x169   : > { %p550_p6 = pnand %p554_p9, %p1321_p2 }
 0x16b   : > { %827 = dma.done.wait (!%p550_p6), %s385_s22, 256  }
 0x16c   : > { %829 = vsyncadd (!%p550_p6), %s385_s22, 4294967040  ;;  %s22_s25 = sadd.s32 1, %s884_s25   ;;  %s1323_s6 = sld [smem:[#allocation14_spill]] }
 0x16d   : > { %p1228_p13 = scmp.ge.s32.totalorder %s22_s25, 6   ;;  %s1324_s21 = sld [smem:[#allocation11_spill]] }
 0x16e   : > { %s1325_s22 = sld [smem:[#allocation12_spill]]  ;;  %s1326_s23 = sld [smem:[#allocation13_spill]] }
 0x16f   : > { %s1327_s24 = sld [smem:[#allocation15_spill]]  ;;  %s1328_s12 = smov %s836_s13 }
 0x170   : > { %s1329_s13 = smov %s840_s14  ;;  %s1330_s14 = smov %s1115_s4 }
 0x171   : > { %s1331_s15 = smov %s848_s16  ;;  %s1332_s16 = smov %s852_s17 }
 0x172   : > { %s1333_s17 = smov %s1112_s11  ;;  %s1334_s18 = smov %s860_s19 }
 0x173   : > { %s1335_s19 = smov %s864_s20  ;;  %s1336_s20 = smov %s1323_s6 }
 0x174   :  { %21 = sbr.rel (!%p1228_p13) target bundleno = 15 (0xf), region = 93 }
 0x17b   :  { %390 = vsyncpa [#allocation3], 1 }
 0x17c   :  { %392 = vsyncpa [#allocation3 + $0x1], 1 }
 0x17d   :  { %393 = vsyncpa [#allocation6], 1 }
 0x17e   :  { %395 = vsyncpa [#allocation6 + $0x1], 1 }
 0x17f   :  { %396 = vsyncpa [#allocation4], 1 }
 0x180   :  { %398 = vsyncpa [#allocation4 + $0x1], 1 }

</bundles_post_ra>
